<compile_context>
chip_gen: v5e
topology: v5e:2x2
jax: 0.10.0
libtpu: 0.0.40
codegen_flags: <defaults>
</compile_context>

<pallas_src>
import functools

import jax
import jax.numpy as jnp
from jax.experimental import pallas as pl
from jax.experimental.pallas import tpu as pltpu


_EPS = 1e-8

_MODE_CONFIG = {
    "all":      (("img_real_score", "z_img_score", "comb_real_score"),
                 ("img_gen_score", "z_noise_score", "comb_gen_score"), 3.0),
    "info_gan": (("img_real_score", "z_img_score", "comb_real_score"),
                 ("img_gen_score", "z_noise_score", "comb_gen_score"), 3.0),
    "no_sx":    (("z_img_score", "comb_real_score"),
                 ("z_noise_score", "comb_gen_score"), 2.0),
    "no_sz":    (("img_real_score", "comb_real_score"),
                 ("img_gen_score", "comb_gen_score"), 2.0),
    "no_sxz":   (("img_real_score", "z_img_score"),
                 ("img_gen_score", "z_noise_score"), 1.0),
}


# ----------------------------------------------------------------------------
# Kernel helpers
# ----------------------------------------------------------------------------
def _score_diff_sum(real_refs, fake_refs):
    """sum over all elements of (sum_i real_i - sum_i fake_i), in f32."""
    acc = real_refs[0][...].astype(jnp.float32) - fake_refs[0][...].astype(jnp.float32)
    for r, f in zip(real_refs[1:], fake_refs[1:]):
        acc = acc + r[...].astype(jnp.float32) - f[...].astype(jnp.float32)
    return jnp.sum(acc)


def _weighted_neg_ce_sum(c_ref, cp_ref, w):
    """w * sum(-c * log(cp + eps)) with a single EUP log stream, f32 math."""
    c = c_ref[...].astype(jnp.float32)
    cp = cp_ref[...].astype(jnp.float32)
    return (-w) * jnp.sum(c * jnp.log(cp + _EPS))


# ----------------------------------------------------------------------------
# Kernels
# ----------------------------------------------------------------------------
def _make_score_kernel(n_scores, inv_scale):
    """correct_gen = (mean(sum real) - mean(sum fake)) / div, fused."""
    def kernel(*refs):
        real_refs = refs[:n_scores]
        fake_refs = refs[n_scores:2 * n_scores]
        out_ref = refs[2 * n_scores]
        out_ref[0] = _score_diff_sum(real_refs, fake_refs) * inv_scale
    return kernel


def _make_info_kernel(n_scores, scale4, w_real, w_fake):
    """info_gan, single shot: 4*cg + 2*ce_real + 1*ce_fake (PyTorch quirk)."""
    def kernel(*refs):
        real_refs = refs[:n_scores]
        fake_refs = refs[n_scores:2 * n_scores]
        cr_ref, cpr_ref, cf_ref, cpg_ref, out_ref = refs[2 * n_scores:2 * n_scores + 5]
        out_ref[0] = (_score_diff_sum(real_refs, fake_refs) * scale4
                      + _weighted_neg_ce_sum(cr_ref, cpr_ref, w_real)
                      + _weighted_neg_ce_sum(cf_ref, cpg_ref, w_fake))
    return kernel


def _make_info_tiled_kernel(n_scores, scale4, w_real, w_fake):
    """info_gan, row-tiled: partial CE sums accumulate into an SMEM scalar."""
    def kernel(*refs):
        real_refs = refs[:n_scores]
        fake_refs = refs[n_scores:2 * n_scores]
        cr_ref, cpr_ref, cf_ref, cpg_ref, out_ref, acc_ref = \
            refs[2 * n_scores:2 * n_scores + 6]
        pid = pl.program_id(0)

        @pl.when(pid == 0)
        def _():
            acc_ref[0] = _score_diff_sum(real_refs, fake_refs) * scale4

        acc_ref[0] += (_weighted_neg_ce_sum(cr_ref, cpr_ref, w_real)
                       + _weighted_neg_ce_sum(cf_ref, cpg_ref, w_fake))

        @pl.when(pid == pl.num_programs(0) - 1)
        def _():
            out_ref[0] = acc_ref[0]
    return kernel


# ----------------------------------------------------------------------------
# Wrapper
# ----------------------------------------------------------------------------
_VMEM_SPEC = pl.BlockSpec(memory_space=pltpu.VMEM)
_SMEM_OUT_SPEC = pl.BlockSpec(memory_space=pltpu.SMEM)

# Use the row-tiled info_gan path only once a single (B, C) f32 class tensor
# exceeds this; keeps tiny inputs on the zero-overhead single-shot kernel.
_TILED_BYTES_THRESHOLD = 4 * 1024 * 1024
_ROW_TILE_CANDIDATES = (1024, 512, 256, 128, 64, 32, 16, 8)


def _pick_row_tile(batch, channels):
    # Keep 4 class blocks x 2 pipeline buffers within ~16 MiB (safe on v7x's
    # 64 MiB physical VMEM and default scoped limits on v5e/v6e).
    budget_rows = (16 * 1024 * 1024) // (32 * max(channels, 1))
    for rt in _ROW_TILE_CANDIDATES:
        if rt <= budget_rows and rt < batch and batch % rt == 0:
            return rt
    return None


def generator_encoder_loss(output, c_real, c_fake, loss_mode, *,
                           rows_per_block=None):
    """Pallas implementation of GeneratorEncoderLoss.forward."""
    if loss_mode not in _MODE_CONFIG:
        raise ValueError(f"unknown loss_mode {loss_mode}")
    real_keys, fake_keys, div = _MODE_CONFIG[loss_mode]

    real_scores = [output[k] for k in real_keys]   # each (B, 1)
    fake_scores = [output[k] for k in fake_keys]   # each (B, 1)
    n = len(real_keys)
    batch = real_scores[0].shape[0]
    # torch.mean over a (B,1) score tensor == sum/B, then the /div combine.
    inv_scale = 1.0 / (float(batch) * div)

    if loss_mode != "info_gan":
        kernel = _make_score_kernel(n, inv_scale)
        out = pl.pallas_call(
            kernel,
            out_shape=jax.ShapeDtypeStruct((1,), jnp.float32),
            in_specs=[_VMEM_SPEC] * (2 * n),
            out_specs=_SMEM_OUT_SPEC,
        )(*real_scores, *fake_scores)
        return out[0]

    # --- info_gan ------------------------------------------------------------
    c_real_pred = output["c_real_predict"]   # (B, C)
    c_gen_pred = output["c_gen_predict"]     # (B, C)
    channels = c_real.shape[1]

    # PyTorch quirk (`correct_gen += correct_gen + lambda_ * I` twice):
    #   final = 4*cg + 2*ce_real + 1*ce_fake       (lambda_ = 1)
    scale4 = 4.0 * inv_scale        # 4*cg folded into the score scale
    w_real = 2.0 / float(batch)
    w_fake = 1.0 / float(batch)

    class_bytes = batch * channels * 4
    cost = pl.CostEstimate(
        flops=2 * n * batch + 6 * batch * channels,
        transcendentals=2 * batch * channels,
        bytes_accessed=4 * class_bytes + 2 * n * batch * 4 + 4,
    )

    if rows_per_block is None and class_bytes > _TILED_BYTES_THRESHOLD:
        rows_per_block = _pick_row_tile(batch, channels)
    if rows_per_block is not None and (rows_per_block >= batch
                                       or batch % rows_per_block != 0
                                       or rows_per_block % 8 != 0):
        rows_per_block = None   # fall back to the single-shot kernel

    if rows_per_block is None:
        kernel = _make_info_kernel(n, scale4, w_real, w_fake)
        out = pl.pallas_call(
            kernel,
            out_shape=jax.ShapeDtypeStruct((1,), jnp.float32),
            in_specs=[_VMEM_SPEC] * (2 * n + 4),
            out_specs=_SMEM_OUT_SPEC,
            cost_estimate=cost,
        )(*real_scores, *fake_scores, c_real, c_real_pred, c_fake, c_gen_pred)
        return out[0]

    # Row-tiled path: bounds VMEM at production-scale B*C (v7x-safe).
    rt = rows_per_block
    grid = (batch // rt,)
    score_specs = [pl.BlockSpec(s.shape, lambda i: (0, 0))
                   for s in (real_scores + fake_scores)]
    class_spec = pl.BlockSpec((rt, channels), lambda i: (i, 0))
    kernel = _make_info_tiled_kernel(n, scale4, w_real, w_fake)
    out = pl.pallas_call(
        kernel,
        out_shape=jax.ShapeDtypeStruct((1,), jnp.float32),
        grid=grid,
        in_specs=score_specs + [class_spec] * 4,
        out_specs=pl.BlockSpec((1,), lambda i: (0,), memory_space=pltpu.SMEM),
        scratch_shapes=[pltpu.SMEM((1,), jnp.float32)],
        compiler_params=pltpu.CompilerParams(dimension_semantics=("arbitrary",)),
        cost_estimate=cost,
    )(*real_scores, *fake_scores, c_real, c_real_pred, c_fake, c_gen_pred)
    return out[0]


# ----------------------------------------------------------------------------
# Pure-JAX reference (mirrors the PyTorch forward exactly, quirks included)
# ----------------------------------------------------------------------------
def _reference_loss(output, c_real, c_fake, loss_mode):
    if loss_mode in ("all", "info_gan"):
        real = jnp.mean(output["img_real_score"] + output["z_img_score"] + output["comb_real_score"])
        fake = jnp.mean(output["img_gen_score"] + output["z_noise_score"] + output["comb_gen_score"])
        cg = (real - fake) / 3
    elif loss_mode == "no_sx":
        real = jnp.mean(output["z_img_score"] + output["comb_real_score"])
        fake = jnp.mean(output["z_noise_score"] + output["comb_gen_score"])
        cg = (real - fake) / 2
    elif loss_mode == "no_sz":
        real = jnp.mean(output["img_real_score"] + output["comb_real_score"])
        fake = jnp.mean(output["img_gen_score"] + output["comb_gen_score"])
        cg = (real - fake) / 2
    elif loss_mode == "no_sxz":
        real = jnp.mean(output["img_real_score"] + output["z_img_score"])
        fake = jnp.mean(output["img_gen_score"] + output["z_noise_score"])
        cg = real - fake
    if loss_mode == "info_gan":
        for c, cp in [(c_real, output["c_real_predict"]), (c_fake, output["c_gen_predict"])]:
            ce = jnp.mean(-jnp.sum(c * jnp.log(cp + 1e-8), axis=1))
            cg = cg + cg + 1.0 * ce
    return cg


# ----------------------------------------------------------------------------
# Test
# ----------------------------------------------------------------------------
def _make_inputs(key, batch, channels):
    ks = jax.random.split(key, 10)

    def score(k):   # discriminator scores in (0, 1) as if post-sigmoid
        return jax.nn.sigmoid(jax.random.normal(k, (batch, 1), dtype=jnp.float32))

    def probs(k):
        return jax.nn.softmax(jax.random.normal(k, (batch, channels), dtype=jnp.float32), axis=1)

    output = {
        "comb_real_score": score(ks[0]),
        "comb_gen_score": score(ks[1]),
        "z_img_score": score(ks[2]),
        "z_noise_score": score(ks[3]),
        "img_real_score": score(ks[4]),
        "img_gen_score": score(ks[5]),
        "c_real_predict": probs(ks[6]),
        "c_gen_predict": probs(ks[7]),
    }
    return output, probs(ks[8]), probs(ks[9])


if __name__ == "__main__":
    k_small, k_big = jax.random.split(jax.random.PRNGKey(0))
    ok = True

    # Small-shape check: all loss modes, single-shot (ungridded) kernels.
    output, c_real, c_fake = _make_inputs(k_small, 8, 16)
    for mode in ("all", "no_sx", "no_sz", "no_sxz", "info_gan"):
        got = jax.block_until_ready(generator_encoder_loss(output, c_real, c_fake, mode))
        want = jax.block_until_ready(_reference_loss(output, c_real, c_fake, mode))
        ok &= bool(jnp.allclose(got, want, rtol=1e-5, atol=1e-5))

    # Exercise the row-tiled info_gan path (the large-B*C scaling guard).
    output2, c_real2, c_fake2 = _make_inputs(k_big, 64, 128)
    got = jax.block_until_ready(
        generator_encoder_loss(output2, c_real2, c_fake2, "info_gan", rows_per_block=16))
    want = jax.block_until_ready(_reference_loss(output2, c_real2, c_fake2, "info_gan"))
    ok &= bool(jnp.allclose(got, want, rtol=1e-4, atol=1e-4))

    print("KERNEL_OK" if ok else "KERNEL_MISMATCH")
</pallas_src>

<mosaic_0001>
module attributes {stable_mosaic.version = 11 : i64} {
  func.func @kernel(%arg0: memref<8x1xf32, #tpu.memory_space<vmem>>, %arg1: memref<8x1xf32, #tpu.memory_space<vmem>>, %arg2: memref<8x1xf32, #tpu.memory_space<vmem>>, %arg3: memref<8x1xf32, #tpu.memory_space<vmem>>, %arg4: memref<8x1xf32, #tpu.memory_space<vmem>>, %arg5: memref<8x1xf32, #tpu.memory_space<vmem>>, %arg6: memref<1xf32, #tpu.memory_space<smem>>) attributes {dimension_semantics = [], scalar_prefetch = 0 : i64, scratch_operands = 0 : i64, tpu.core_type = #tpu.core_type<tc>} {
    %c0 = arith.constant 0 : index
    %c0_0 = arith.constant 0 : index
    %0 = vector.load %arg0[%c0, %c0_0] : memref<8x1xf32, #tpu.memory_space<vmem>>, vector<8x1xf32>
    %c0_1 = arith.constant 0 : index
    %c0_2 = arith.constant 0 : index
    %1 = vector.load %arg3[%c0_1, %c0_2] : memref<8x1xf32, #tpu.memory_space<vmem>>, vector<8x1xf32>
    %2 = arith.subf %0, %1 : vector<8x1xf32>
    %c0_3 = arith.constant 0 : index
    %c0_4 = arith.constant 0 : index
    %3 = vector.load %arg1[%c0_3, %c0_4] : memref<8x1xf32, #tpu.memory_space<vmem>>, vector<8x1xf32>
    %4 = arith.addf %2, %3 : vector<8x1xf32>
    %c0_5 = arith.constant 0 : index
    %c0_6 = arith.constant 0 : index
    %5 = vector.load %arg4[%c0_5, %c0_6] : memref<8x1xf32, #tpu.memory_space<vmem>>, vector<8x1xf32>
    %6 = arith.subf %4, %5 : vector<8x1xf32>
    %c0_7 = arith.constant 0 : index
    %c0_8 = arith.constant 0 : index
    %7 = vector.load %arg2[%c0_7, %c0_8] : memref<8x1xf32, #tpu.memory_space<vmem>>, vector<8x1xf32>
    %8 = arith.addf %6, %7 : vector<8x1xf32>
    %c0_9 = arith.constant 0 : index
    %c0_10 = arith.constant 0 : index
    %9 = vector.load %arg5[%c0_9, %c0_10] : memref<8x1xf32, #tpu.memory_space<vmem>>, vector<8x1xf32>
    %10 = arith.subf %8, %9 : vector<8x1xf32>
    %11 = vector.shape_cast %10 : vector<8x1xf32> to vector<1x8x1xf32>
    %cst = arith.constant dense<0.000000e+00> : vector<1xf32>
    %12 = vector.multi_reduction <add>, %11, %cst [1, 2] : vector<1x8x1xf32> to vector<1xf32>
    %13 = vector.shape_cast %12 : vector<1xf32> to vector<1x1x1xf32>
    %14 = vector.extract %13[0, 0, 0] : f32 from vector<1x1x1xf32>
    %cst_11 = arith.constant 0.0416666679 : f32
    %15 = arith.mulf %14, %cst_11 : f32
    %c0_12 = arith.constant 0 : index
    %16 = memref.load %arg6[%c0_12] : memref<1xf32, #tpu.memory_space<smem>>
    memref.store %15, %arg6[%c0_12] : memref<1xf32, #tpu.memory_space<smem>>
    return
  }
}

</mosaic_0001>

<bundles_post_ra>
// kernel: tpu_custom_call.1
= control target key start
LH: loop header
LB: loop body
LE: loop exit
PB: predicated region body
PF: predicated region fallthrough
CT: control target
= control target key end

     0   :  { %s138_s0 = inlined_call_operand.vmem [shape: f32[8,1], index: 0, kind: input, shape index: {}]   ;;  %s139_s1 = inlined_call_operand.vmem [shape: f32[8,1], index: 1, kind: input, shape index: {}]   ;;  %s140_s2 = inlined_call_operand.vmem [shape: f32[8,1], index: 2, kind: input, shape index: {}]   ;;  %s141_s3 = inlined_call_operand.vmem [shape: f32[8,1], index: 3, kind: input, shape index: {}]   ;;  %s142_s4 = inlined_call_operand.vmem [shape: f32[8,1], index: 4, kind: input, shape index: {}]   ;;  %s143_s5 = inlined_call_operand.vmem [shape: f32[8,1], index: 5, kind: input, shape index: {}]   ;;  %s144_s6 = inlined_call_operand.hbm [shape: f32[1], index: 6, kind: output, shape index: {}]  }
   0x1   :  { %v24_v0 = vld [vmem:[%s138_s0] sm:$0xff] }
   0x2   :  { %v25_v1 = vld [vmem:[%s141_s3] sm:$0xff] }
   0x3   :  { %v27_v2 = vld [vmem:[%s139_s1] sm:$0xff]  ;;  %v26_v3 = vsub.f32 %v24_v0, %v25_v1 }
   0x4   :  { %v29_v4 = vld [vmem:[%s142_s4] sm:$0xff] }
   0x5   :  { %11 = vsyncpa [#allocation3], 0  ;;  %v28_v5 = vadd.f32 %v27_v2, %v26_v3  ;;  %v31_v6 = vld [vmem:[%s140_s2] sm:$0xff]  ;;  %vm35_vm0 = vcmask 7168   ;;  %s54_s3 = sshll.u32 %s144_s6, 4  ;;  %s81_s8 = smov [#allocation2]   ;;  %s55_s3 = int_to_ptr.hbm [resolvable:$true] %s54_s3 }
   0x6   :  { %v33_v8 = vld [vmem:[%s143_s5] sm:$0xff] }
   0x7   :  { %v30_v7 = vsub.f32 %v28_v5, %v29_v4 }
   0x9   :  { %v32_v9 = vadd.f32 %v31_v6, %v30_v7 }
   0xb   :  { %v34_v10 = vsub.f32 %v32_v9, %v33_v8 }
   0xd   :  { %v36_v11 = vsel %vm35_vm0, %v34_v10, 0.0 }
   0xe   :  { %37 = vadd.xlane.f32.xlu0 %v36_v11 }
  0x81   :  { %v38_v12 = vpop.xlane.xlu0 %37 }
  0x82   :  { %v39_v13 = vrot.slane %v38_v12, 4 }
  0x84   :  { %v40_v14 = vadd.f32 %v39_v13, %v38_v12 }
  0x86   :  { %v41_v15 = vrot.slane %v40_v14, 2 }
  0x88   :  { %v42_v16 = vadd.f32 %v41_v15, %v40_v14 }
  0x8a   :  { %v43_v17 = vrot.slane %v42_v16, 1 }
  0x8c   :  { %v44_v18 = vadd.f32 %v43_v17, %v42_v16 }
  0x8e   :  { %64 = vpush %v44_v18 }
  0xbf   :  { %s65_s4 = spop %64 }
  0xc0   :  { %s46_s5 = smul.f32 0.041666668, %s65_s4 }
  0xc2   :  { %48 = sst [smem:[#allocation2]] %s46_s5 }
  0xc3   :  { %57 = dma.smem_to_hbm %s81_s8, 16, %s55_s3, [#allocation3]  }
  0xc4   :  { %79 = dma.done.wait [#allocation3], 16  }
  0xc5   :  { %80 = vsyncadd [#allocation3], 4294967280 }
  0xc6   :  { %62 = sfence }
  0xc7   :  { %63 = vsyncpa [#allocation3], 1 }

</bundles_post_ra>
